<compile_context>
chip_gen: v5e
topology: v5e:2x2
jax: 0.10.0
libtpu: 0.0.40
codegen_flags: <defaults>
</compile_context>

<pallas_src>
from functools import partial

import jax
import jax.numpy as jnp
from jax import lax
from jax.experimental import pallas as pl
from jax.experimental.pallas import tpu as pltpu

KH = KW = 3
STRIDE = 2
PAD = (KH - STRIDE + 1) // 2            # get_padding(3, 2)           -> 1
OUT_PAD = 2 * PAD + STRIDE - KH         # get_output_padding(3, 2, 1) -> 1
EPS = 1e-5                              # InstanceNorm2d default eps
NEG_SLOPE = 0.01                        # LeakyReLU negative slope


def _phase_taps():
    """ConvTranspose2d(k=3, s=2, p=1, out_p=1) phase decomposition.

    Output pixel (2m+a, 2n+b) = sum over taps (kh, kw) of w[:, kh, kw] * x[:, m+dm, n+dn]:
      a == 0: (kh=1, dm=0);   a == 1: (kh=2, dm=0) and (kh=0, dm=1)   (same for b/kw/dn)
    Returns, per phase ph = 2*a + b, a tuple of (kh*KW + kw, dm, dn).
    """
    taps = []
    for a in (0, 1):
        for b in (0, 1):
            t = []
            for kh, dm in (((1, 0),) if a == 0 else ((2, 0), (0, 1))):
                for kw, dn in (((1, 0),) if b == 0 else ((2, 0), (0, 1))):
                    t.append((kh * KW + kw, dm, dn))
            taps.append(tuple(t))
    return tuple(taps)


PHASE_TAPS = _phase_taps()


def _dp_decoder_kernel(x_ref, s_ref, mask_ref, w_ref, b_ref, out_ref, xpad_ref, *,
                       width, nb):
    # x_ref   : (nb, Cx, HW)          "x" half of the channel concat (storage dtype)
    # s_ref   : (nb, Cs, HW)          "skip" half of the channel concat
    # mask_ref: (1, HW) f32           zeros where n == W-1 (kills row-wrap of dn=1 shifts)
    # w_ref   : (4*Cout, 4*Cin) f32   phase-stacked (rows) / shift-stacked (cols) weights
    # b_ref   : (4*Cout, 1) f32       combined dw+pw bias, tiled over the 4 phases
    # out_ref : (nb, 4*Cout, HW) f32  lane-dense phase slabs, row index = ph*Cout + c
    # xpad_ref: (Cin, HW + 2*W) f32   scratch: concatenated input + 2 appended zero rows
    cin, padded_hw = xpad_ref.shape
    cx = x_ref.shape[1]
    hw = out_ref.shape[2]
    cout = b_ref.shape[0] // 4

    w_all = w_ref[...].astype(jnp.float32)          # (4*Cout, 4*Cin)
    bias = b_ref[...].astype(jnp.float32)           # (4*Cout, 1)
    colmask = mask_ref[...]                         # (1, HW)

    # Zero the 2 appended rows once per grid step.  Invariant: the dm=1 shifted slices
    # below overrun into exactly this zero tail (so no explicit row mask is needed).
    xpad_ref[:, hw:] = jnp.zeros((cin, padded_hw - hw), jnp.float32)

    inv_count = 1.0 / float(4 * hw)                 # 1 / ((2H)*(2W))

    for i in range(nb):                             # static unroll over the batch block
        # In-kernel channel concat (torch.cat([x, skip], dim=1)) into the padded scratch;
        # compute stays f32 even if the HBM storage dtype is bf16 (v5e-safe).
        xpad_ref[0:cx, 0:hw] = x_ref[i].astype(jnp.float32)
        xpad_ref[cx:cin, 0:hw] = s_ref[i].astype(jnp.float32)
        xp = xpad_ref[...]                          # (Cin, HW + 2W)

        # The 4 distinct shifted views, built once, stacked on the contraction axis.
        x00 = xp[:, 0:hw]                                 # (dm, dn) = (0, 0)
        x01 = xp[:, 1:1 + hw] * colmask                   # (0, 1)
        x10 = xp[:, width:width + hw]                     # (1, 0)  (reads zero pad rows)
        x11 = xp[:, width + 1:width + 1 + hw] * colmask   # (1, 1)
        xstk = jnp.concatenate([x00, x01, x10, x11], axis=0)      # (4*Cin, HW)

        # One MXU matmul yields all 4 phases x all Cout channels, lane-dense.
        z = jnp.dot(w_all, xstk, preferred_element_type=jnp.float32) + bias  # (4*Cout, HW)

        # InstanceNorm statistics per channel over all 4 phases (= the full 2H x 2W plane).
        # NOTE: E[z^2]-E[z]^2 in f32; fine here, revisit if inputs can be large-offset.
        rs = jnp.sum(z, axis=1, keepdims=True)            # (4*Cout, 1)
        rq = jnp.sum(z * z, axis=1, keepdims=True)
        s1 = rs[0:cout] + rs[cout:2 * cout] + rs[2 * cout:3 * cout] + rs[3 * cout:]
        s2 = rq[0:cout] + rq[cout:2 * cout] + rq[2 * cout:3 * cout] + rq[3 * cout:]
        mean = s1 * inv_count
        var = s2 * inv_count - mean * mean                # biased variance (PyTorch IN)
        inv = lax.rsqrt(var + EPS)                        # EUP
        mean4 = jnp.concatenate([mean, mean, mean, mean], axis=0)   # (4*Cout, 1)
        inv4 = jnp.concatenate([inv, inv, inv, inv], axis=0)

        zn = (z - mean4) * inv4
        out_ref[i] = jnp.maximum(zn, NEG_SLOPE * zn)      # LeakyReLU(0.01)


def _build_fused_weights(dw_w, dw_b, pw_w, pw_b):
    """Fuse depthwise-transposed + pointwise weights into one phase/shift-stacked matrix."""
    Cin = dw_w.shape[0]
    Cout = pw_w.shape[0]
    dw2 = dw_w[:, 0, :, :].reshape(Cin, KH * KW)          # (Cin, 9)
    pw2 = pw_w[:, :, 0, 0]                                # (Cout, Cin)
    w_all = jnp.zeros((4 * Cout, 4 * Cin), jnp.float32)
    for ph, taps in enumerate(PHASE_TAPS):
        for k, dm, dn in taps:
            s = 2 * dm + dn                               # shift block index
            m_k = pw2 * dw2[:, k][None, :]                # (Cout, Cin): pw[o,c]*dw[c,kh,kw]
            w_all = w_all.at[ph * Cout:(ph + 1) * Cout, s * Cin:(s + 1) * Cin].add(m_k)
    bias = (pw2 @ dw_b + pw_b).reshape(Cout, 1)           # dw bias folded through pw
    bias_all = jnp.tile(bias, (4, 1)).astype(jnp.float32) # (4*Cout, 1)
    return w_all, bias_all


def dp_decoder_forward(x_nchw, skip_nchw, params, *, storage_dtype=jnp.float32,
                       batch_block=None):
    """Pallas-backed DP_Decoder.forward.  Inputs/outputs use PyTorch NCHW layout."""
    dw_w, dw_b, pw_w, pw_b = params
    N, Cx, H, W = x_nchw.shape
    Cs = skip_nchw.shape[1]
    Cin = Cx + Cs
    Cout = pw_w.shape[0]
    HW = H * W

    w_all, bias_all = _build_fused_weights(dw_w, dw_b, pw_w, pw_b)

    # No concat / pad / copy of activations in the wrapper: the reshape is free
    # (contiguous), the concat + 2-row zero pad happen in VMEM inside the kernel.
    # storage_dtype=jnp.bfloat16 halves input HBM traffic on v6e/v7x (compute stays f32).
    x_flat = x_nchw.reshape(N, Cx, HW).astype(storage_dtype)
    s_flat = skip_nchw.reshape(N, Cs, HW).astype(storage_dtype)

    # Column mask for the dn=1 shifts (their flat slice wraps to the next row at n==W-1).
    colmask = ((jnp.arange(HW, dtype=jnp.int32) % W) != (W - 1)).astype(jnp.float32)
    colmask = colmask.reshape(1, HW)

    # Whole batch in one grid step (nb = N) to amortize per-step pipeline overhead.
    # TODO(synk): for large N on v7x, pick batch_block = N//2 and pltpu.CORE_PARALLEL on
    # the batch axis to split across the 2 TensorCores.
    nb = N if batch_block is None else batch_block
    assert N % nb == 0, "batch_block must divide N"

    # TODO(synk): add row-strip spatial tiling (accumulator-style IN stats with pl.when
    # init/finalize) for production H*W so blocks stay within v7x's 64 MiB VMEM.
    out = pl.pallas_call(
        partial(_dp_decoder_kernel, width=W, nb=nb),
        out_shape=jax.ShapeDtypeStruct((N, 4 * Cout, HW), jnp.float32),
        grid_spec=pltpu.PrefetchScalarGridSpec(
            num_scalar_prefetch=0,
            grid=(N // nb,),
            in_specs=[
                pl.BlockSpec((nb, Cx, HW), lambda g: (g, 0, 0)),
                pl.BlockSpec((nb, Cs, HW), lambda g: (g, 0, 0)),
                pl.BlockSpec((1, HW), lambda g: (0, 0)),
                pl.BlockSpec((4 * Cout, 4 * Cin), lambda g: (0, 0)),
                pl.BlockSpec((4 * Cout, 1), lambda g: (0, 0)),
            ],
            out_specs=pl.BlockSpec((nb, 4 * Cout, HW), lambda g: (g, 0, 0)),
            scratch_shapes=[pltpu.VMEM((Cin, HW + 2 * W), jnp.float32)],
        ),
        compiler_params=pltpu.CompilerParams(dimension_semantics=("parallel",)),
    )(x_flat, s_flat, colmask, w_all, bias_all)

    # Merge the 4 phase slabs into NCHW.  At HW=256 this transpose is noise; for real
    # decoder resolutions keep the phase layout and fuse the interleave into the consumer.
    # TODO(synk): fuse the phase interleave into the consumer for production feature maps.
    out = out.reshape(N, 2, 2, Cout, H, W)            # (N, a, b, Cout, m, n)
    out = jnp.transpose(out, (0, 3, 4, 1, 5, 2))      # (N, Cout, m, a, n, b)
    return out.reshape(N, Cout, 2 * H, 2 * W)


def dp_decoder_ref(x_nchw, skip_nchw, params):
    """Pure-JAX reference (independent of the kernel's phase decomposition)."""
    dw_w, dw_b, pw_w, pw_b = params
    xc = jnp.concatenate([x_nchw, skip_nchw], axis=1)
    Cin = xc.shape[1]
    w_flip = dw_w[:, :, ::-1, ::-1]                   # (Cin, 1, 3, 3) OIHW
    lo, hi = KH - 1 - PAD, KH - 1 - PAD + OUT_PAD
    y = lax.conv_general_dilated(
        xc, w_flip, window_strides=(1, 1),
        padding=((lo, hi), (lo, hi)),
        lhs_dilation=(STRIDE, STRIDE),
        feature_group_count=Cin,
        dimension_numbers=("NCHW", "OIHW", "NCHW"))
    y = y + dw_b[None, :, None, None]
    z = jnp.einsum("nchw,oc->nohw", y, pw_w[:, :, 0, 0]) + pw_b[None, :, None, None]
    mean = z.mean(axis=(2, 3), keepdims=True)
    var = ((z - mean) ** 2).mean(axis=(2, 3), keepdims=True)
    zn = (z - mean) * lax.rsqrt(var + EPS)
    return jnp.where(zn > 0, zn, NEG_SLOPE * zn)


if __name__ == "__main__":
    key = jax.random.PRNGKey(0)
    k1, k2, k3, k4, k5, k6 = jax.random.split(key, 6)

    N, Cx, Cs, H, W = 2, 4, 4, 16, 16
    Cin = Cx + Cs              # DP_Decoder in_channels (after the channel concat)
    Cout = 16                  # DP_Decoder out_channels

    x = jax.random.normal(k1, (N, Cx, H, W), jnp.float32)
    skip = jax.random.normal(k2, (N, Cs, H, W), jnp.float32)

    # Deterministic synthetic parameters (shapes from the module's __init__):
    #   depthwise ConvTranspose2d weight (Cin, 1, 3, 3) + bias (Cin,)
    #   pointwise Conv2d weight (Cout, Cin, 1, 1) + bias (Cout,)
    dw_w = 0.1 * jax.random.normal(k3, (Cin, 1, KH, KW), jnp.float32)
    dw_b = 0.1 * jax.random.normal(k4, (Cin,), jnp.float32)
    pw_w = 0.1 * jax.random.normal(k5, (Cout, Cin, 1, 1), jnp.float32)
    pw_b = 0.1 * jax.random.normal(k6, (Cout,), jnp.float32)
    params = (dw_w, dw_b, pw_w, pw_b)

    out = jax.jit(dp_decoder_forward)(x, skip, params)
    out = jax.block_until_ready(out)

    assert out.shape == (N, Cout, 2 * H, 2 * W), out.shape
    ref = dp_decoder_ref(x, skip, params)
    max_err = float(jnp.max(jnp.abs(out - ref)))
    if max_err > 1e-3:
        raise AssertionError(f"kernel/reference mismatch: max abs err = {max_err}")

    print("KERNEL_OK")
</pallas_src>

<mosaic_0001>
module attributes {stable_mosaic.version = 11 : i64} {
  func.func @_dp_decoder_kernel(%arg0: i32, %arg1: memref<2x4x256xf32, #tpu.memory_space<vmem>>, %arg2: memref<2x4x256xf32, #tpu.memory_space<vmem>>, %arg3: memref<1x256xf32, #tpu.memory_space<vmem>>, %arg4: memref<64x32xf32, #tpu.memory_space<vmem>>, %arg5: memref<64x1xf32, #tpu.memory_space<vmem>>, %arg6: memref<2x64x256xf32, #tpu.memory_space<vmem>>, %arg7: memref<8x288xf32, #tpu.memory_space<vmem>>) attributes {dimension_semantics = [#tpu.dimension_semantics<parallel>], iteration_bounds = array<i64: 1>, scalar_prefetch = 0 : i64, scratch_operands = 1 : i64, tpu.core_type = #tpu.core_type<tc>, window_params = [{transform_indices = @transform_0, window_bounds = array<i64: 2, 4, 256>}, {transform_indices = @transform_1, window_bounds = array<i64: 2, 4, 256>}, {pipeline_mode = #tpu.pipeline_mode<synchronous>, transform_indices = @transform_2, window_bounds = array<i64: 1, 256>}, {pipeline_mode = #tpu.pipeline_mode<synchronous>, transform_indices = @transform_3, window_bounds = array<i64: 64, 32>}, {pipeline_mode = #tpu.pipeline_mode<synchronous>, transform_indices = @transform_4, window_bounds = array<i64: 64, 1>}, {transform_indices = @transform_5, window_bounds = array<i64: 2, 64, 256>}]} {
    %c0 = arith.constant 0 : index
    %c0_0 = arith.constant 0 : index
    %0 = vector.load %arg4[%c0, %c0_0] : memref<64x32xf32, #tpu.memory_space<vmem>>, vector<64x32xf32>
    %c0_1 = arith.constant 0 : index
    %c0_2 = arith.constant 0 : index
    %1 = vector.load %arg5[%c0_1, %c0_2] : memref<64x1xf32, #tpu.memory_space<vmem>>, vector<64x1xf32>
    %c0_3 = arith.constant 0 : index
    %c0_4 = arith.constant 0 : index
    %2 = vector.load %arg3[%c0_3, %c0_4] : memref<1x256xf32, #tpu.memory_space<vmem>>, vector<1x256xf32>
    %cst = arith.constant 0.000000e+00 : f32
    %3 = vector.broadcast %cst : f32 to vector<8x32xf32>
    %c0_5 = arith.constant 0 : index
    %c256 = arith.constant 256 : index
    %4 = vector.load %arg7[%c0_5, %c256] : memref<8x288xf32, #tpu.memory_space<vmem>>, vector<8x32xf32>
    tpu.vector_store %arg7[%c0_5, %c256], %3 {strides = array<i32>} : memref<8x288xf32, #tpu.memory_space<vmem>>, vector<8x32xf32>,
    %c0_6 = arith.constant 0 : index
    %c0_7 = arith.constant 0 : index
    %c0_8 = arith.constant 0 : index
    %5 = vector.load %arg1[%c0_6, %c0_7, %c0_8] : memref<2x4x256xf32, #tpu.memory_space<vmem>>, vector<1x4x256xf32>
    %6 = vector.shape_cast %5 : vector<1x4x256xf32> to vector<4x256xf32>
    %c0_9 = arith.constant 0 : index
    %c0_10 = arith.constant 0 : index
    %7 = vector.load %arg7[%c0_9, %c0_10] : memref<8x288xf32, #tpu.memory_space<vmem>>, vector<4x256xf32>
    tpu.vector_store %arg7[%c0_9, %c0_10], %6 {strides = array<i32>} : memref<8x288xf32, #tpu.memory_space<vmem>>, vector<4x256xf32>,
    %c0_11 = arith.constant 0 : index
    %c0_12 = arith.constant 0 : index
    %c0_13 = arith.constant 0 : index
    %8 = vector.load %arg2[%c0_11, %c0_12, %c0_13] : memref<2x4x256xf32, #tpu.memory_space<vmem>>, vector<1x4x256xf32>
    %9 = vector.shape_cast %8 : vector<1x4x256xf32> to vector<4x256xf32>
    %c4 = arith.constant 4 : index
    %c0_14 = arith.constant 0 : index
    %10 = vector.load %arg7[%c4, %c0_14] : memref<8x288xf32, #tpu.memory_space<vmem>>, vector<4x256xf32>
    tpu.vector_store %arg7[%c4, %c0_14], %9 {strides = array<i32>} : memref<8x288xf32, #tpu.memory_space<vmem>>, vector<4x256xf32>,
    %c0_15 = arith.constant 0 : index
    %c0_16 = arith.constant 0 : index
    %11 = vector.load %arg7[%c0_15, %c0_16] : memref<8x288xf32, #tpu.memory_space<vmem>>, vector<8x288xf32>
    %12 = vector.extract_strided_slice %11 {offsets = [0, 0], sizes = [8, 256], strides = [1, 1]} : vector<8x288xf32> to vector<8x256xf32>
    %13 = vector.extract_strided_slice %11 {offsets = [0, 1], sizes = [8, 256], strides = [1, 1]} : vector<8x288xf32> to vector<8x256xf32>
    %14 = vector.broadcast %2 : vector<1x256xf32> to vector<8x256xf32>
    %15 = arith.mulf %13, %14 : vector<8x256xf32>
    %16 = vector.extract_strided_slice %11 {offsets = [0, 16], sizes = [8, 256], strides = [1, 1]} : vector<8x288xf32> to vector<8x256xf32>
    %17 = vector.extract_strided_slice %11 {offsets = [0, 17], sizes = [8, 256], strides = [1, 1]} : vector<8x288xf32> to vector<8x256xf32>
    %18 = vector.broadcast %2 : vector<1x256xf32> to vector<8x256xf32>
    %19 = arith.mulf %17, %18 : vector<8x256xf32>
    %20 = tpu.concatenate %12, %15, %16, %19 in 0 : vector<8x256xf32>, vector<8x256xf32>, vector<8x256xf32>, vector<8x256xf32> -> vector<32x256xf32>
    %cst_17 = arith.constant dense<0.000000e+00> : vector<64x256xf32>
    %21 = tpu.matmul %0, %20, %cst_17 {dimension_numbers = #tpu.dot_dimension_numbers<[1], [0], [0], [1], [0, 0, 1, 1], [], []>} : vector<64x32xf32>, vector<32x256xf32>, vector<64x256xf32> -> vector<64x256xf32>
    %22 = vector.broadcast %1 : vector<64x1xf32> to vector<64x256xf32>
    %23 = arith.addf %21, %22 : vector<64x256xf32>
    %cst_18 = arith.constant dense<0.000000e+00> : vector<64xf32>
    %24 = vector.multi_reduction <add>, %23, %cst_18 [1] : vector<64x256xf32> to vector<64xf32>
    %25 = vector.shape_cast %24 : vector<64xf32> to vector<64x1xf32>
    %26 = arith.mulf %23, %23 : vector<64x256xf32>
    %cst_19 = arith.constant dense<0.000000e+00> : vector<64xf32>
    %27 = vector.multi_reduction <add>, %26, %cst_19 [1] : vector<64x256xf32> to vector<64xf32>
    %28 = vector.shape_cast %27 : vector<64xf32> to vector<64x1xf32>
    %29 = vector.extract_strided_slice %25 {offsets = [0, 0], sizes = [16, 1], strides = [1, 1]} : vector<64x1xf32> to vector<16x1xf32>
    %30 = vector.extract_strided_slice %25 {offsets = [16, 0], sizes = [16, 1], strides = [1, 1]} : vector<64x1xf32> to vector<16x1xf32>
    %31 = arith.addf %29, %30 : vector<16x1xf32>
    %32 = vector.extract_strided_slice %25 {offsets = [32, 0], sizes = [16, 1], strides = [1, 1]} : vector<64x1xf32> to vector<16x1xf32>
    %33 = arith.addf %31, %32 : vector<16x1xf32>
    %34 = vector.extract_strided_slice %25 {offsets = [48, 0], sizes = [16, 1], strides = [1, 1]} : vector<64x1xf32> to vector<16x1xf32>
    %35 = arith.addf %33, %34 : vector<16x1xf32>
    %36 = vector.extract_strided_slice %28 {offsets = [0, 0], sizes = [16, 1], strides = [1, 1]} : vector<64x1xf32> to vector<16x1xf32>
    %37 = vector.extract_strided_slice %28 {offsets = [16, 0], sizes = [16, 1], strides = [1, 1]} : vector<64x1xf32> to vector<16x1xf32>
    %38 = arith.addf %36, %37 : vector<16x1xf32>
    %39 = vector.extract_strided_slice %28 {offsets = [32, 0], sizes = [16, 1], strides = [1, 1]} : vector<64x1xf32> to vector<16x1xf32>
    %40 = arith.addf %38, %39 : vector<16x1xf32>
    %41 = vector.extract_strided_slice %28 {offsets = [48, 0], sizes = [16, 1], strides = [1, 1]} : vector<64x1xf32> to vector<16x1xf32>
    %42 = arith.addf %40, %41 : vector<16x1xf32>
    %cst_20 = arith.constant 9.765625E-4 : f32
    %43 = vector.broadcast %cst_20 : f32 to vector<16x1xf32>
    %44 = arith.mulf %35, %43 : vector<16x1xf32>
    %cst_21 = arith.constant 9.765625E-4 : f32
    %45 = vector.broadcast %cst_21 : f32 to vector<16x1xf32>
    %46 = arith.mulf %42, %45 : vector<16x1xf32>
    %47 = arith.mulf %44, %44 : vector<16x1xf32>
    %48 = arith.subf %46, %47 : vector<16x1xf32>
    %cst_22 = arith.constant 9.99999974E-6 : f32
    %49 = vector.broadcast %cst_22 : f32 to vector<16x1xf32>
    %50 = arith.addf %48, %49 : vector<16x1xf32>
    %51 = math.rsqrt %50 : vector<16x1xf32>
    %52 = tpu.concatenate %44, %44, %44, %44 in 0 : vector<16x1xf32>, vector<16x1xf32>, vector<16x1xf32>, vector<16x1xf32> -> vector<64x1xf32>
    %53 = tpu.concatenate %51, %51, %51, %51 in 0 : vector<16x1xf32>, vector<16x1xf32>, vector<16x1xf32>, vector<16x1xf32> -> vector<64x1xf32>
    %54 = vector.broadcast %52 : vector<64x1xf32> to vector<64x256xf32>
    %55 = arith.subf %23, %54 : vector<64x256xf32>
    %56 = vector.broadcast %53 : vector<64x1xf32> to vector<64x256xf32>
    %57 = arith.mulf %55, %56 : vector<64x256xf32>
    %cst_23 = arith.constant 0.00999999977 : f32
    %58 = vector.broadcast %cst_23 : f32 to vector<64x256xf32>
    %59 = arith.mulf %58, %57 : vector<64x256xf32>
    %60 = arith.maximumf %57, %59 : vector<64x256xf32>
    %c0_24 = arith.constant 0 : index
    %c0_25 = arith.constant 0 : index
    %c0_26 = arith.constant 0 : index
    %61 = vector.load %arg6[%c0_24, %c0_25, %c0_26] : memref<2x64x256xf32, #tpu.memory_space<vmem>>, vector<1x64x256xf32>
    %62 = vector.shape_cast %61 : vector<1x64x256xf32> to vector<64x256xf32>
    %63 = vector.shape_cast %60 : vector<64x256xf32> to vector<1x64x256xf32>
    tpu.vector_store %arg6[%c0_24, %c0_25, %c0_26], %63 {strides = array<i32>} : memref<2x64x256xf32, #tpu.memory_space<vmem>>, vector<1x64x256xf32>,
    %c1 = arith.constant 1 : index
    %c0_27 = arith.constant 0 : index
    %c0_28 = arith.constant 0 : index
    %64 = vector.load %arg1[%c1, %c0_27, %c0_28] : memref<2x4x256xf32, #tpu.memory_space<vmem>>, vector<1x4x256xf32>
    %65 = vector.shape_cast %64 : vector<1x4x256xf32> to vector<4x256xf32>
    %c0_29 = arith.constant 0 : index
    %c0_30 = arith.constant 0 : index
    %66 = vector.load %arg7[%c0_29, %c0_30] : memref<8x288xf32, #tpu.memory_space<vmem>>, vector<4x256xf32>
    tpu.vector_store %arg7[%c0_29, %c0_30], %65 {strides = array<i32>} : memref<8x288xf32, #tpu.memory_space<vmem>>, vector<4x256xf32>,
    %c1_31 = arith.constant 1 : index
    %c0_32 = arith.constant 0 : index
    %c0_33 = arith.constant 0 : index
    %67 = vector.load %arg2[%c1_31, %c0_32, %c0_33] : memref<2x4x256xf32, #tpu.memory_space<vmem>>, vector<1x4x256xf32>
    %68 = vector.shape_cast %67 : vector<1x4x256xf32> to vector<4x256xf32>
    %c4_34 = arith.constant 4 : index
    %c0_35 = arith.constant 0 : index
    %69 = vector.load %arg7[%c4_34, %c0_35] : memref<8x288xf32, #tpu.memory_space<vmem>>, vector<4x256xf32>
    tpu.vector_store %arg7[%c4_34, %c0_35], %68 {strides = array<i32>} : memref<8x288xf32, #tpu.memory_space<vmem>>, vector<4x256xf32>,
    %c0_36 = arith.constant 0 : index
    %c0_37 = arith.constant 0 : index
    %70 = vector.load %arg7[%c0_36, %c0_37] : memref<8x288xf32, #tpu.memory_space<vmem>>, vector<8x288xf32>
    %71 = vector.extract_strided_slice %70 {offsets = [0, 0], sizes = [8, 256], strides = [1, 1]} : vector<8x288xf32> to vector<8x256xf32>
    %72 = vector.extract_strided_slice %70 {offsets = [0, 1], sizes = [8, 256], strides = [1, 1]} : vector<8x288xf32> to vector<8x256xf32>
    %73 = vector.broadcast %2 : vector<1x256xf32> to vector<8x256xf32>
    %74 = arith.mulf %72, %73 : vector<8x256xf32>
    %75 = vector.extract_strided_slice %70 {offsets = [0, 16], sizes = [8, 256], strides = [1, 1]} : vector<8x288xf32> to vector<8x256xf32>
    %76 = vector.extract_strided_slice %70 {offsets = [0, 17], sizes = [8, 256], strides = [1, 1]} : vector<8x288xf32> to vector<8x256xf32>
    %77 = vector.broadcast %2 : vector<1x256xf32> to vector<8x256xf32>
    %78 = arith.mulf %76, %77 : vector<8x256xf32>
    %79 = tpu.concatenate %71, %74, %75, %78 in 0 : vector<8x256xf32>, vector<8x256xf32>, vector<8x256xf32>, vector<8x256xf32> -> vector<32x256xf32>
    %cst_38 = arith.constant dense<0.000000e+00> : vector<64x256xf32>
    %80 = tpu.matmul %0, %79, %cst_38 {dimension_numbers = #tpu.dot_dimension_numbers<[1], [0], [0], [1], [0, 0, 1, 1], [], []>} : vector<64x32xf32>, vector<32x256xf32>, vector<64x256xf32> -> vector<64x256xf32>
    %81 = vector.broadcast %1 : vector<64x1xf32> to vector<64x256xf32>
    %82 = arith.addf %80, %81 : vector<64x256xf32>
    %cst_39 = arith.constant dense<0.000000e+00> : vector<64xf32>
    %83 = vector.multi_reduction <add>, %82, %cst_39 [1] : vector<64x256xf32> to vector<64xf32>
    %84 = vector.shape_cast %83 : vector<64xf32> to vector<64x1xf32>
    %85 = arith.mulf %82, %82 : vector<64x256xf32>
    %cst_40 = arith.constant dense<0.000000e+00> : vector<64xf32>
    %86 = vector.multi_reduction <add>, %85, %cst_40 [1] : vector<64x256xf32> to vector<64xf32>
    %87 = vector.shape_cast %86 : vector<64xf32> to vector<64x1xf32>
    %88 = vector.extract_strided_slice %84 {offsets = [0, 0], sizes = [16, 1], strides = [1, 1]} : vector<64x1xf32> to vector<16x1xf32>
    %89 = vector.extract_strided_slice %84 {offsets = [16, 0], sizes = [16, 1], strides = [1, 1]} : vector<64x1xf32> to vector<16x1xf32>
    %90 = arith.addf %88, %89 : vector<16x1xf32>
    %91 = vector.extract_strided_slice %84 {offsets = [32, 0], sizes = [16, 1], strides = [1, 1]} : vector<64x1xf32> to vector<16x1xf32>
    %92 = arith.addf %90, %91 : vector<16x1xf32>
    %93 = vector.extract_strided_slice %84 {offsets = [48, 0], sizes = [16, 1], strides = [1, 1]} : vector<64x1xf32> to vector<16x1xf32>
    %94 = arith.addf %92, %93 : vector<16x1xf32>
    %95 = vector.extract_strided_slice %87 {offsets = [0, 0], sizes = [16, 1], strides = [1, 1]} : vector<64x1xf32> to vector<16x1xf32>
    %96 = vector.extract_strided_slice %87 {offsets = [16, 0], sizes = [16, 1], strides = [1, 1]} : vector<64x1xf32> to vector<16x1xf32>
    %97 = arith.addf %95, %96 : vector<16x1xf32>
    %98 = vector.extract_strided_slice %87 {offsets = [32, 0], sizes = [16, 1], strides = [1, 1]} : vector<64x1xf32> to vector<16x1xf32>
    %99 = arith.addf %97, %98 : vector<16x1xf32>
    %100 = vector.extract_strided_slice %87 {offsets = [48, 0], sizes = [16, 1], strides = [1, 1]} : vector<64x1xf32> to vector<16x1xf32>
    %101 = arith.addf %99, %100 : vector<16x1xf32>
    %cst_41 = arith.constant 9.765625E-4 : f32
    %102 = vector.broadcast %cst_41 : f32 to vector<16x1xf32>
    %103 = arith.mulf %94, %102 : vector<16x1xf32>
    %cst_42 = arith.constant 9.765625E-4 : f32
    %104 = vector.broadcast %cst_42 : f32 to vector<16x1xf32>
    %105 = arith.mulf %101, %104 : vector<16x1xf32>
    %106 = arith.mulf %103, %103 : vector<16x1xf32>
    %107 = arith.subf %105, %106 : vector<16x1xf32>
    %cst_43 = arith.constant 9.99999974E-6 : f32
    %108 = vector.broadcast %cst_43 : f32 to vector<16x1xf32>
    %109 = arith.addf %107, %108 : vector<16x1xf32>
    %110 = math.rsqrt %109 : vector<16x1xf32>
    %111 = tpu.concatenate %103, %103, %103, %103 in 0 : vector<16x1xf32>, vector<16x1xf32>, vector<16x1xf32>, vector<16x1xf32> -> vector<64x1xf32>
    %112 = tpu.concatenate %110, %110, %110, %110 in 0 : vector<16x1xf32>, vector<16x1xf32>, vector<16x1xf32>, vector<16x1xf32> -> vector<64x1xf32>
    %113 = vector.broadcast %111 : vector<64x1xf32> to vector<64x256xf32>
    %114 = arith.subf %82, %113 : vector<64x256xf32>
    %115 = vector.broadcast %112 : vector<64x1xf32> to vector<64x256xf32>
    %116 = arith.mulf %114, %115 : vector<64x256xf32>
    %cst_44 = arith.constant 0.00999999977 : f32
    %117 = vector.broadcast %cst_44 : f32 to vector<64x256xf32>
    %118 = arith.mulf %117, %116 : vector<64x256xf32>
    %119 = arith.maximumf %116, %118 : vector<64x256xf32>
    %c1_45 = arith.constant 1 : index
    %c0_46 = arith.constant 0 : index
    %c0_47 = arith.constant 0 : index
    %120 = vector.load %arg6[%c1_45, %c0_46, %c0_47] : memref<2x64x256xf32, #tpu.memory_space<vmem>>, vector<1x64x256xf32>
    %121 = vector.shape_cast %120 : vector<1x64x256xf32> to vector<64x256xf32>
    %122 = vector.shape_cast %119 : vector<64x256xf32> to vector<1x64x256xf32>
    tpu.vector_store %arg6[%c1_45, %c0_46, %c0_47], %122 {strides = array<i32>} : memref<2x64x256xf32, #tpu.memory_space<vmem>>, vector<1x64x256xf32>,
    return
  }
  func.func @transform_0(%arg0: i32) -> (i32, i32, i32) {
    %c0_i32 = arith.constant 0 : i32
    %c0_i32_0 = arith.constant 0 : i32
    %c0_i32_1 = arith.constant 0 : i32
    return %arg0, %c0_i32, %c0_i32_0 : i32, i32, i32
  }
  func.func @transform_1(%arg0: i32) -> (i32, i32, i32) {
    %c0_i32 = arith.constant 0 : i32
    %c0_i32_0 = arith.constant 0 : i32
    %c0_i32_1 = arith.constant 0 : i32
    return %arg0, %c0_i32, %c0_i32_0 : i32, i32, i32
  }
  func.func @transform_2(%arg0: i32) -> (i32, i32) {
    %c0_i32 = arith.constant 0 : i32
    %c0_i32_0 = arith.constant 0 : i32
    %c0_i32_1 = arith.constant 0 : i32
    return %c0_i32, %c0_i32_0 : i32, i32
  }
  func.func @transform_3(%arg0: i32) -> (i32, i32) {
    %c0_i32 = arith.constant 0 : i32
    %c0_i32_0 = arith.constant 0 : i32
    %c0_i32_1 = arith.constant 0 : i32
    return %c0_i32, %c0_i32_0 : i32, i32
  }
  func.func @transform_4(%arg0: i32) -> (i32, i32) {
    %c0_i32 = arith.constant 0 : i32
    %c0_i32_0 = arith.constant 0 : i32
    %c0_i32_1 = arith.constant 0 : i32
    return %c0_i32, %c0_i32_0 : i32, i32
  }
  func.func @transform_5(%arg0: i32) -> (i32, i32, i32) {
    %c0_i32 = arith.constant 0 : i32
    %c0_i32_0 = arith.constant 0 : i32
    %c0_i32_1 = arith.constant 0 : i32
    return %arg0, %c0_i32, %c0_i32_0 : i32, i32, i32
  }
}

</mosaic_0001>

<bundles_post_ra>
// kernel: squeeze.11
= control target key start
LH: loop header
LB: loop body
LE: loop exit
PB: predicated region body
PF: predicated region fallthrough
CT: control target
= control target key end

     0   :  { %vm15_vm0 = vcmask 64512   ;;  %s59_s0 = inlined_call_operand.vmem [shape: f32[8,3,3], index: 0, kind: input, shape index: {}]   ;;  %s60_s1 = inlined_call_operand.vmem [shape: f32[8,9], index: 1, kind: output, shape index: {}]  }
   0x1   :  { %v27_v0 = vld [vmem:[%s59_s0 + $0x8] sm:$0xf]  ;;  %v28_v1 = vld [vmem:[%s59_s0 + $0x4] sm:$0xf]  ;;  %v12_v2 = vld [vmem:[%s59_s0] sm:$0xf] }
   0x2   :  { %7 = vst [vmem:[#allocation0] sm:$0xf] %v27_v0 }
   0x3   :  { %11 = vst [vmem:[#allocation0 + $0x10] sm:$0xf] %v28_v1 }
   0x4   :  { %13 = vst [vmem:[#allocation0 + $0x8] sm:$0xf] %v12_v2 }
   0x9   :  { %v23_v3 = vld [vmem:[#allocation0] sm:$0x7]  }
   0xa   :  { %v18_v4 = vld [vmem:[#allocation0 + $0x10] sm:$0x7]   ;;  %30 = vst.msk [vmem:[%s60_s1 + $0x6] sm:$0x7] %vm15_vm0, %v23_v3  }
   0xb   :  { %v14_v5 = vld [vmem:[#allocation0 + $0x8] sm:$0x7]   ;;  %29 = vst.msk [vmem:[%s60_s1 + $0x3] sm:$0x7] %vm15_vm0, %v18_v4  }
   0xc   :  { %16 = vst.msk [vmem:[%s60_s1] sm:$0x7] %vm15_vm0, %v14_v5  }

// kernel: dp_decoder_forward.1
= control target key start
LH: loop header
LB: loop body
LE: loop exit
PB: predicated region body
PF: predicated region fallthrough
CT: control target
= control target key end

     0   :  { %s957_s20 = smov 1   ;;  %s958_s21 = smov 17   ;;  %vm37_vm0 = vcmask 261120   ;;  %v959_v17 = vmov 0.0   ;;  %vm80_vm1 = vcmask 138240   ;;  %vm68_vm2 = vcmask 7168   ;;  %s1430_s2 = inlined_call_operand.vmem [shape: f32[1,256], index: 2, kind: input, shape index: {}]   ;;  %s1431_s0 = inlined_call_operand.vmem [shape: f32[2,4,256], index: 0, kind: input, shape index: {}]   ;;  %s1432_s1 = inlined_call_operand.vmem [shape: f32[2,4,256], index: 1, kind: input, shape index: {}]   ;;  %s1433_s4 = inlined_call_operand.vmem [shape: f32[64,1], index: 4, kind: input, shape index: {}]   ;;  %s1434_s3 = inlined_call_operand.vmem [shape: f32[64,32], index: 3, kind: input, shape index: {}]   ;;  %s1435_s5 = inlined_call_operand.vmem [shape: f32[2,64,256], index: 5, kind: output, shape index: {}]  }
   0x1   :  { %v36_v0 = vld [vmem:[%s1430_s2] sm:$0x3]  ;;  %v860_v7 = vld [vmem:[%s1431_s0 + $0x8] sm:$0xff]  ;;  %38 = vst.msk [vmem:[#allocation2 + $0x10] sm:$0xff] %vm37_vm0, %v959_v17  ;;  %s962_s29 = smov 111   ;;  %vm125_vm3 = vcmask 908288  }
   0x2   :  { %v62_v1 = vperm.slane %v36_v0, 0  ;;  %v63_v2 = vperm.slane %v36_v0, 1  ;;  %v39_v3 = vld [vmem:[%s1431_s0] sm:$0xff]  ;;  %v861_v10 = vld [vmem:[%s1432_s1 + $0x8] sm:$0xff]  ;;  %s960_s0 = smov 112   ;;  %vm111_vm4 = vcmask 916480  }
   0x3   :  { %41 = vst [vmem:[#allocation1] ss:$2 sm:$0xff] %v39_v3  ;;  %v48_v6 = vld [vmem:[%s1432_s1] sm:$0xff]  ;;  %s961_s1 = smov 127   ;;  %vm97_vm5 = vcmask 1039360   ;;  %v963_v62 = vmov 0  }
   0x4   :  { %64 = vrot.lane.b32.xlu1 %v62_v1, %s957_s20  ;;  %76 = vrot.lane.b32.xlu0 %v62_v1, %s958_s21  ;;  %v28_v60 = vld [vmem:[%s1433_s4] sm:$0xff] }
   0x5   :  { %946 = vset.pattern.permute.xlu1 %v963_v62  ;;  %948 = vset.pattern.permute.xlu0 %v963_v62 }
   0x6   :  { %947 = vset.pattern.permute.xlu2 %v963_v62 }
   0x8   :  { %v505_v21 = vld [vmem:[#allocation2 + $0x10] sm:$0xff] }
   0xa   :  { %v42_v4 = vld.sshfl [vmem:[#allocation1] sm:$0xff pattern:$0x75316420]  ;;  %v43_v5 = vld.sshfl [vmem:[#allocation1 + $0x8] sm:$0xff pattern:$0x75316420] }
   0xb   :  { %46 = vst [vmem:[#allocation2] sm:$0xf] %v42_v4 }
   0xc   :  { %66 = vrot.lane.b32.xlu1 %v63_v2, %s957_s20  ;;  %78 = vrot.lane.b32.xlu0 %v63_v2, %s958_s21  ;;  %47 = vst [vmem:[#allocation2 + $0x8] sm:$0xf] %v43_v5  ;;  %v20_v2 = vld [vmem:[%s1434_s3] sm:$0xff] }
   0xd   :  { %51 = vst [vmem:[#allocation1 + $0x1] ss:$2 sm:$0xff] %v48_v6  ;;  %v31_v6 = vld [vmem:[%s1433_s4 + $0x18] sm:$0xff] }
  0x14   :  { %v52_v8 = vld.sshfl [vmem:[#allocation1] sm:$0xff pattern:$0x75316420]  ;;  %v53_v9 = vld.sshfl [vmem:[#allocation1 + $0x8] sm:$0xff pattern:$0x75316420] }
  0x15   :  { %56 = vst [vmem:[#allocation2] sm:$0xf0] %v52_v8 }
  0x16   :  { %485 = vst [vmem:[#allocation1] ss:$2 sm:$0xff] %v860_v7 }
  0x17   :  { %57 = vst [vmem:[#allocation2 + $0x8] sm:$0xf0] %v53_v9 }
  0x1c   :  { %v1009_v13 = vld [vmem:[#allocation2] sm:$0xff] }
  0x1d   :  { %v486_v11 = vld.sshfl [vmem:[#allocation1] sm:$0xff pattern:$0x75316420]  ;;  %v487_v12 = vld.sshfl [vmem:[#allocation1 + $0x8] sm:$0xff pattern:$0x75316420]  ;;  %v901_v22 = vpack.i.bf16 %v1009_v13, %v505_v21 }
  0x1e   :  { %496 = vst [vmem:[#allocation1 + $0x1] ss:$2 sm:$0xff] %v861_v10  ;;  %v1011_v14 = vld [vmem:[#allocation2 + $0x8] sm:$0xff] }
  0x1f   :  { %490 = vst [vmem:[#allocation2] sm:$0xf] %v486_v11  ;;  %902 = vrot.lane.b32.xlu1 %v901_v22, %s960_s0  ;;  %v936_v45 = vpack.i.bf16 %v505_v21, %v1011_v14  ;;  %v21_v22 = vld [vmem:[%s1434_s3 + $0x8] sm:$0xff] }
  0x20   :  { %491 = vst [vmem:[#allocation2 + $0x8] sm:$0xf] %v487_v12 }
  0x25   :  { %v497_v15 = vld.sshfl [vmem:[#allocation1] sm:$0xff pattern:$0x75316420]  ;;  %v498_v16 = vld.sshfl [vmem:[#allocation1 + $0x8] sm:$0xff pattern:$0x75316420] }
  0x26   :  { %501 = vst [vmem:[#allocation2] sm:$0xf0] %v497_v15 }
  0x27   :  { %502 = vst [vmem:[#allocation2 + $0x8] sm:$0xf0] %v498_v16 }
  0x2d   :  { %v1014_v18 = vld [vmem:[#allocation2] sm:$0xff] }
  0x2e   :  { %v1016_v19 = vld [vmem:[#allocation2 + $0x8] sm:$0xff] }
  0x2f   :  { %v906_v20 = vpack.i.bf16 %v1016_v19, %v1014_v18 }
  0x31   :  { %907 = vrot.lane.b32.xlu0 %v906_v20, %s960_s0 }
  0x76   :  { %v65_v23 = vpop.permute.xlu1 %64  ;;  %v77_v24 = vpop.permute.xlu0 %76 }
  0x77   :  { %v73_v27 = vmul.f32 %v65_v23, %v1009_v13  ;;  %v85_v32 = vmul.f32 %v77_v24, %v1009_v13  ;;  %v509_v39 = vmul.f32 %v1014_v18, %v77_v24  ;;  %v506_v43 = vmul.f32 %v1014_v18, %v65_v23 }
  0x7e   :  { %v67_v25 = vpop.permute.xlu1 %66  ;;  %v79_v26 = vpop.permute.xlu0 %78 }
  0x7f   :  { %v508_v28 = vmul.f32 %v505_v21, %v67_v25  ;;  %v81_v29 = vsel %vm80_vm1, %v77_v24, %v79_v26  ;;  %v87_v31 = vmul.f32 %v505_v21, %v79_v26  ;;  %v69_v34 = vsel %vm68_vm2, %v65_v23, %v67_v25 }
  0x80   :  { %v86_v30 = vmul.f32 %v81_v29, %v1011_v14  ;;  %v74_v37 = vmul.f32 %v69_v34, %v1011_v14  ;;  %v510_v38 = vmul.f32 %v1016_v19, %v81_v29  ;;  %v507_v42 = vmul.f32 %v1016_v19, %v69_v34  ;;  %v24_v34 = vld [vmem:[%s1434_s3 + $0x20] sm:$0xff] }
  0x81   :  { %v916_v33 = vpack.i.bf16 %v73_v27, %v508_v28  ;;  %v911_v36 = vpack.i.bf16 %v85_v32, %v87_v31  ;;  %v29_v27 = vld [vmem:[%s1433_s4 + $0x8] sm:$0xff]  ;;  %v32_v32 = vld [vmem:[%s1433_s4 + $0x20] sm:$0xff] }
  0x82   :  { %v931_v35 = vpack.i.bf16 %v87_v31, %v86_v30  ;;  %v941_v40 = vpack.i.bf16 %v508_v28, %v74_v37  ;;  %v921_v41 = vpack.i.bf16 %v510_v38, %v509_v39  ;;  %v926_v44 = vpack.i.bf16 %v507_v42, %v506_v43  ;;  %v30_v28 = vld [vmem:[%s1433_s4 + $0x10] sm:$0xff]  ;;  %v27_v37 = vld [vmem:[%s1434_s3 + $0x38] sm:$0xff] }
  0x83   :  { %917 = vrot.lane.b32.xlu0 %v916_v33, %s961_s1  ;;  %912 = vrot.lane.b32.xlu2 %v911_v36, %s962_s29  ;;  %v22_v31 = vld [vmem:[%s1434_s3 + $0x10] sm:$0xff] }
  0x84   :  { %932 = vrot.lane.b32.xlu1 %v931_v35, %s962_s29  ;;  %v34_v33 = vld [vmem:[%s1433_s4 + $0x30] sm:$0xff]  ;;  %v25_v35 = vld [vmem:[%s1434_s3 + $0x28] sm:$0xff] }
  0x85   :  { %v26_v36 = vld [vmem:[%s1434_s3 + $0x30] sm:$0xff] }
  0x8b   :  { %942 = vrot.lane.b32.xlu0 %v941_v40, %s961_s1  ;;  %922 = vrot.lane.b32.xlu2 %v921_v41, %s962_s29 }
  0x8c   :  { %132 = vperm.xlu1 %946, %v28_v60  }
  0x91   :  { %v903_v48 = vpop.permute.xlu1 %902 }
  0x92   :  { %v904_v51 = vunpack.i.l.bf16 %v903_v48  ;;  %v905_v16 = vunpack.i.h.bf16 %v903_v48 }
  0x93   :  { %927 = vrot.lane.b32.xlu2 %v926_v44, %s961_s1  ;;  %142 = vperm.xlu0 %948, %v30_v28  }
  0x94   :  { %147 = vperm.xlu1 %946, %v31_v6  }
  0x9b   :  { %937 = vrot.lane.b32.xlu2 %v936_v45, %s960_s0 }
  0xa3   :  { %v908_v47 = vpop.permute.xlu0 %907  ;;  %137 = vperm.xlu2 %947, %v29_v27  }
  0xa4   :  { %v910_v49 = vunpack.i.h.bf16 %v908_v47  ;;  %v909_v50 = vunpack.i.l.bf16 %v908_v47 }
  0xa6   :  { %v534_v58 = vsel %vm111_vm4, %v909_v50, %v910_v49  ;;  %v535_v59 = vsel %vm111_vm4, %v910_v49, %v904_v51 }
  0xab   :  { %152 = vperm.xlu2 %947, %v32_v32  }
  0xb3   :  { %162 = vperm.xlu2 %947, %v34_v33  }
  0xdd   :  { %v913_v46 = vpop.permute.xlu2 %912 }
  0xde   :  { %v914_v53 = vunpack.i.l.bf16 %v913_v46  ;;  %v915_v7 = vunpack.i.h.bf16 %v913_v46 }
  0xe5   :  { %v923_v52 = vpop.permute.xlu2 %922 }
  0xe6   :  { %v925_v54 = vunpack.i.h.bf16 %v923_v52  ;;  %v924_v55 = vunpack.i.l.bf16 %v923_v52 }
  0xe8   :  { %v547_v56 = vsel %vm125_vm3, %v924_v55, %v925_v54  ;;  %v548_v57 = vsel %vm125_vm3, %v925_v54, %v914_v53 }
  0xe9   :  { %563 = vmatpush.msra.mxu2 %v547_v56  ;;  %604 = vmatpush.msra.mxu3 %v548_v57 }
  0xeb   :  { %564 = vmatpush.msra.mxu2 %v534_v58  ;;  %605 = vmatpush.msra.mxu3 %v535_v59 }
  0xed   :  { %v928_v61 = vpop.permute.xlu2 %927 }
  0xee   :  { %v930_v63 = vunpack.i.h.bf16 %v928_v61  ;;  %v929_v0 = vunpack.i.l.bf16 %v928_v61 }
  0xf0   :  { %v521_v1 = vsel %vm97_vm5, %v929_v0, %v930_v63 }
  0xf1   :  { %565 = vmatpush.msra.mxu2 %v521_v1 }
  0xf3   :  { %566 = vmatpush.msra.mxu2 %v1014_v18 }
  0xf4   :  { %862 = vmatmul.msk.f32.vlgmr.msra.gmra.mxu2 %vm37_vm0, %v20_v2 }
  0xf5   :  { %v918_v3 = vpop.permute.xlu0 %917  ;;  %v938_v8 = vpop.permute.xlu2 %937 }
  0xf6   :  { %v919_v4 = vunpack.i.l.bf16 %v918_v3  ;;  %v933_v5 = vpop.permute.xlu1 %932  ;;  %v940_v11 = vunpack.i.h.bf16 %v938_v8  ;;  %v939_v12 = vunpack.i.l.bf16 %v938_v8  ;;  %v920_v24 = vunpack.i.h.bf16 %v918_v3 }
  0xf7   :  { %v935_v9 = vunpack.i.h.bf16 %v933_v5  ;;  %v934_v10 = vunpack.i.l.bf16 %v933_v5 }
  0xf8   :  { %v522_v15 = vsel %vm97_vm5, %v930_v63, %v919_v4  ;;  %v113_v20 = vsel %vm111_vm4, %v939_v12, %v940_v11  ;;  %v112_v21 = vsel %vm111_vm4, %v905_v16, %v939_v12 }
  0xf9   :  { %606 = vmatpush.msra.mxu3 %v522_v15  ;;  %v126_v17 = vsel %vm125_vm3, %v915_v7, %v934_v10  ;;  %v127_v18 = vsel %vm125_vm3, %v934_v10, %v935_v9 }
  0xfa   :  { %206 = vmatpush.msra.mxu0 %v126_v17  ;;  %247 = vmatpush.msra.mxu1 %v127_v18 }
  0xfb   :  { %607 = vmatpush.msra.mxu3 %v1016_v19  ;;  %v33_v19 = vld [vmem:[%s1433_s4 + $0x28] sm:$0xff] }
  0xfc   :  { %207 = vmatpush.msra.mxu0 %v112_v21  ;;  %870 = vmatmul.msk.f32.vlgmr.msra.gmra.mxu3 %vm37_vm0, %v20_v2 }
  0xfd   :  { %v943_v23 = vpop.permute.xlu0 %942  ;;  %248 = vmatpush.msra.mxu1 %v113_v20  ;;  %863 = vmatmul.msk.f32.gmra.mxu2 %vm37_vm0, %v21_v22  ;;  %v138_v50 = vpop.permute.xlu2 %137 }
  0xfe   :  { %v945_v25 = vunpack.i.h.bf16 %v943_v23  ;;  %v944_v26 = vunpack.i.l.bf16 %v943_v23  ;;  %157 = vperm.xlu1 %946, %v33_v19   ;;  %v133_v39 = vpop.permute.xlu1 %132 }
 0x100   :  { %v98_v29 = vsel %vm97_vm5, %v920_v24, %v944_v26  ;;  %v99_v30 = vsel %vm97_vm5, %v944_v26, %v945_v25 }
 0x101   :  { %208 = vmatpush.msra.mxu0 %v98_v29  ;;  %249 = vmatpush.msra.mxu1 %v99_v30 }
 0x103   :  { %209 = vmatpush.msra.mxu0 %v1009_v13  ;;  %250 = vmatpush.msra.mxu1 %v1011_v14  ;;  %v35_v13 = vld [vmem:[%s1433_s4 + $0x38] sm:$0xff] }
 0x104   :  { %844 = vmatmul.msk.f32.vlgmr.msra.gmra.mxu0 %vm37_vm0, %v20_v2  ;;  %852 = vmatmul.msk.f32.vlgmr.msra.gmra.mxu1 %vm37_vm0, %v20_v2  ;;  %v23_v14 = vld [vmem:[%s1434_s3 + $0x18] sm:$0xff] }
 0x105   :  { %871 = vmatmul.msk.f32.gmra.mxu3 %vm37_vm0, %v21_v22  ;;  %864 = vmatmul.msk.f32.gmra.mxu2 %vm37_vm0, %v22_v31  ;;  %v143_v62 = vpop.permute.xlu0 %142  ;;  %v153_v24 = vpop.permute.xlu2 %152 }
 0x106   :  { %167 = vperm.xlu0 %948, %v35_v13  }
 0x10c   :  { %845 = vmatmul.msk.f32.gmra.mxu0 %vm37_vm0, %v21_v22  ;;  %853 = vmatmul.msk.f32.gmra.mxu1 %vm37_vm0, %v21_v22  ;;  %v148_v22 = vpop.permute.xlu1 %147 }
 0x10d   :  { %872 = vmatmul.msk.f32.gmra.mxu3 %vm37_vm0, %v22_v31  ;;  %865 = vmatmul.msk.f32.gmra.mxu2 %vm37_vm0, %v23_v14 }
 0x114   :  { %846 = vmatmul.msk.f32.gmra.mxu0 %vm37_vm0, %v22_v31  ;;  %854 = vmatmul.msk.f32.gmra.mxu1 %vm37_vm0, %v22_v31 }
 0x115   :  { %873 = vmatmul.msk.f32.gmra.mxu3 %vm37_vm0, %v23_v14  ;;  %866 = vmatmul.msk.f32.gmra.mxu2 %vm37_vm0, %v24_v34 }
 0x11c   :  { %847 = vmatmul.msk.f32.gmra.mxu0 %vm37_vm0, %v23_v14  ;;  %855 = vmatmul.msk.f32.gmra.mxu1 %vm37_vm0, %v23_v14 }
 0x11d   :  { %874 = vmatmul.msk.f32.gmra.mxu3 %vm37_vm0, %v24_v34  ;;  %867 = vmatmul.msk.f32.gmra.mxu2 %vm37_vm0, %v25_v35 }
 0x124   :  { %848 = vmatmul.msk.f32.gmra.mxu0 %vm37_vm0, %v24_v34  ;;  %856 = vmatmul.msk.f32.gmra.mxu1 %vm37_vm0, %v24_v34 }
 0x125   :  { %875 = vmatmul.msk.f32.gmra.mxu3 %vm37_vm0, %v25_v35  ;;  %868 = vmatmul.msk.f32.gmra.mxu2 %vm37_vm0, %v26_v36 }
 0x12c   :  { %849 = vmatmul.msk.f32.gmra.mxu0 %vm37_vm0, %v25_v35  ;;  %857 = vmatmul.msk.f32.gmra.mxu1 %vm37_vm0, %v25_v35 }
 0x12d   :  { %876 = vmatmul.msk.f32.gmra.mxu3 %vm37_vm0, %v26_v36  ;;  %869 = vmatmul.msk.f32.gmra.mxu2 %vm37_vm0, %v27_v37 }
 0x134   :  { %850 = vmatmul.msk.f32.gmra.mxu0 %vm37_vm0, %v26_v36  ;;  %858 = vmatmul.msk.f32.gmra.mxu1 %vm37_vm0, %v26_v36 }
 0x135   :  { %877 = vmatmul.msk.f32.gmra.mxu3 %vm37_vm0, %v27_v37 }
 0x13c   :  { %851 = vmatmul.msk.f32.gmra.mxu0 %vm37_vm0, %v27_v37  ;;  %859 = vmatmul.msk.f32.gmra.mxu1 %vm37_vm0, %v27_v37 }
 0x170   :  { %v158_v35 = vpop.permute.xlu1 %157 }
 0x177   :  { %v568_v40 = vpop.f32.mrf.mxu2 }
 0x178   :  { %v1139_v51 = vadd.f32 %v568_v40, %v133_v39 }
 0x17f   :  { %v609_v38 = vpop.f32.mrf.mxu3 }
 0x180   :  { %v1141_v52 = vadd.f32 %v609_v38, %v133_v39  ;;  %v571_v54 = vpop.f32.mrf.mxu2 }
 0x181   :  { %v211_v41 = vpop.f32.mrf.mxu0  ;;  %v252_v43 = vpop.f32.mrf.mxu1  ;;  %v1155_v3 = vadd.f32 %v571_v54, %v138_v50 }
 0x182   :  { %v1129_v42 = vadd.f32 %v211_v41, %v133_v39  ;;  %v1131_v44 = vadd.f32 %v252_v43, %v133_v39  ;;  %v633_v60 = vadd.f32 %v1141_v52, %v1139_v51 }
 0x184   :  { %v300_v45 = vmul.f32 %v1129_v42, %v1129_v42  ;;  %v276_v46 = vadd.f32 %v1131_v44, %v1129_v42  ;;  %v301_v47 = vmul.f32 %v1131_v44, %v1131_v44 }
 0x186   :  { %277 = vadd.xlane.f32.xlu1 %v276_v46  ;;  %v316_v48 = vadd.f32 %v301_v47, %v300_v45 }
 0x188   :  { %v612_v49 = vpop.f32.mrf.mxu3  ;;  %317 = vadd.xlane.f32.xlu2 %v316_v48  ;;  %v574_v6 = vpop.f32.mrf.mxu2 }
 0x189   :  { %v214_v53 = vpop.f32.mrf.mxu0  ;;  %v255_v56 = vpop.f32.mrf.mxu1  ;;  %v1157_v4 = vadd.f32 %v612_v49, %v138_v50  ;;  %v1169_v15 = vadd.f32 %v574_v6, %v143_v62 }
 0x18a   :  { %v1143_v55 = vadd.f32 %v214_v53, %v138_v50  ;;  %v1145_v57 = vadd.f32 %v255_v56, %v138_v50 }
 0x18b   :  { %v636_v10 = vadd.f32 %v1157_v4, %v1155_v3 }
 0x18c   :  { %v302_v58 = vmul.f32 %v1143_v55, %v1143_v55  ;;  %v303_v59 = vmul.f32 %v1145_v57, %v1145_v57  ;;  %v279_v11 = vadd.f32 %v1145_v57, %v1143_v55 }
 0x18e   :  { %v319_v61 = vadd.f32 %v303_v59, %v302_v58 }
 0x190   :  { %320 = vadd.xlane.f32.xlu0 %v319_v61  ;;  %634 = vadd.xlane.f32.xlu2 %v633_v60  ;;  %v615_v0 = vpop.f32.mrf.mxu3  ;;  %v577_v20 = vpop.f32.mrf.mxu2 }
 0x191   :  { %v217_v63 = vpop.f32.mrf.mxu0  ;;  %v258_v2 = vpop.f32.mrf.mxu1  ;;  %v1171_v16 = vadd.f32 %v615_v0, %v143_v62  ;;  %v1187_v31 = vadd.f32 %v577_v20, %v148_v22 }
 0x192   :  { %v1153_v1 = vadd.f32 %v217_v63, %v143_v62  ;;  %v1159_v5 = vadd.f32 %v258_v2, %v143_v62  ;;  %v168_v2 = vpop.permute.xlu0 %167 }
 0x193   :  { %v639_v21 = vadd.f32 %v1171_v16, %v1169_v15 }
 0x194   :  { %v304_v7 = vmul.f32 %v1153_v1, %v1153_v1  ;;  %v305_v8 = vmul.f32 %v1159_v5, %v1159_v5  ;;  %v282_v23 = vadd.f32 %v1159_v5, %v1153_v1 }
 0x196   :  { %v322_v9 = vadd.f32 %v305_v8, %v304_v7  ;;  %v163_v7 = vpop.permute.xlu2 %162 }
 0x198   :  { %323 = vadd.xlane.f32.xlu1 %v322_v9  ;;  %637 = vadd.xlane.f32.xlu0 %v636_v10  ;;  %v618_v18 = vpop.f32.mrf.mxu3  ;;  %v580_v33 = vpop.f32.mrf.mxu2 }
 0x199   :  { %v220_v12 = vpop.f32.mrf.mxu0  ;;  %280 = vadd.xlane.f32.xlu2 %v279_v11  ;;  %v261_v17 = vpop.f32.mrf.mxu1  ;;  %v1179_v27 = vadd.f32 %v618_v18, %v148_v22  ;;  %v1217_v62 = vadd.f32 %v580_v33, %v153_v24 }
 0x19a   :  { %v1183_v29 = vadd.f32 %v220_v12, %v148_v22  ;;  %v1185_v30 = vadd.f32 %v261_v17, %v148_v22  ;;  %v658_v22 = vmul.f32 %v1141_v52, %v1141_v52 }
 0x19b   :  { %v642_v14 = vadd.f32 %v1179_v27, %v1187_v31 }
 0x19c   :  { %v285_v34 = vadd.f32 %v1185_v30, %v1183_v29  ;;  %v306_v45 = vmul.f32 %v1183_v29, %v1183_v29  ;;  %v307_v46 = vmul.f32 %v1185_v30, %v1185_v30 }
 0x19e   :  { %v325_v53 = vadd.f32 %v307_v46, %v306_v45  ;;  %v664_v46 = vmul.f32 %v1179_v27, %v1179_v27 }
 0x1a0   :  { %283 = vadd.xlane.f32.xlu0 %v282_v23  ;;  %v621_v13 = vpop.f32.mrf.mxu3  ;;  %v583_v56 = vpop.f32.mrf.mxu2  ;;  %v661_v23 = vmul.f32 %v1169_v15, %v1169_v15 }
 0x1a1   :  { %v223_v25 = vpop.f32.mrf.mxu0  ;;  %640 = vadd.xlane.f32.xlu2 %v639_v21  ;;  %v264_v19 = vpop.f32.mrf.mxu1  ;;  %v1213_v60 = vadd.f32 %v621_v13, %v153_v24  ;;  %v1215_v61 = vadd.f32 %v583_v56, %v158_v35  ;;  %v657_v21 = vmul.f32 %v1139_v51, %v1139_v51 }
 0x1a2   :  { %v1177_v26 = vadd.f32 %v223_v25, %v153_v24  ;;  %v1181_v28 = vadd.f32 %v264_v19, %v153_v24  ;;  %v662_v24 = vmul.f32 %v1171_v16, %v1171_v16 }
 0x1a3   :  { %1439 = vst [vmem:[#allocation3_spill] sm:$0xff] %v1213_v60  ;;  %v645_v0 = vadd.f32 %v1213_v60, %v1217_v62  ;;  %v666_v45 = vmul.f32 %v1213_v60, %v1213_v60 }
 0x1a4   :  { %v288_v32 = vadd.f32 %v1181_v28, %v1177_v26  ;;  %v308_v40 = vmul.f32 %v1177_v26, %v1177_v26  ;;  %v309_v41 = vmul.f32 %v1181_v28, %v1181_v28  ;;  %v679_v13 = vadd.f32 %v662_v24, %v661_v23 }
 0x1a6   :  { %289 = vadd.xlane.f32.xlu1 %v288_v32  ;;  %v328_v49 = vadd.f32 %v309_v41, %v308_v40  ;;  %v673_v32 = vadd.f32 %v658_v22, %v657_v21 }
 0x1a8   :  { %643 = vadd.xlane.f32.xlu0 %v642_v14  ;;  %v624_v50 = vpop.f32.mrf.mxu3 }
 0x1a9   :  { %v226_v36 = vpop.f32.mrf.mxu0  ;;  %286 = vadd.xlane.f32.xlu2 %v285_v34  ;;  %v267_v38 = vpop.f32.mrf.mxu1  ;;  %v1211_v59 = vadd.f32 %v624_v50, %v158_v35 }
 0x1aa   :  { %v1195_v37 = vadd.f32 %v226_v36, %v158_v35  ;;  %v1197_v39 = vadd.f32 %v267_v38, %v158_v35  ;;  %v586_v34 = vpop.f32.mrf.mxu2  ;;  %v659_v36 = vmul.f32 %v1155_v3, %v1155_v3  ;;  %v660_v38 = vmul.f32 %v1157_v4, %v1157_v4 }
 0x1ab   :  { %v648_v63 = vadd.f32 %v1211_v59, %v1215_v61  ;;  %v1255_v40 = vadd.f32 %v586_v34, %v163_v7  ;;  %v668_v56 = vmul.f32 %v1211_v59, %v1211_v59 }
 0x1ac   :  { %v310_v43 = vmul.f32 %v1195_v37, %v1195_v37  ;;  %v311_v47 = vmul.f32 %v1197_v39, %v1197_v39  ;;  %v291_v20 = vadd.f32 %v1197_v39, %v1195_v37 }
 0x1ad   :  { %1441 = vst [vmem:[#allocation5_spill] sm:$0xff] %v1255_v40 }
 0x1ae   :  { %v331_v48 = vadd.f32 %v311_v47, %v310_v43  ;;  %v676_v43 = vadd.f32 %v660_v38, %v659_v36  ;;  %v665_v47 = vmul.f32 %v1217_v62, %v1217_v62 }
 0x1b0   :  { %332 = vadd.xlane.f32.xlu1 %v331_v48  ;;  %329 = vadd.xlane.f32.xlu0 %v328_v49  ;;  %v627_v14 = vpop.f32.mrf.mxu3  ;;  %v663_v48 = vmul.f32 %v1187_v31, %v1187_v31  ;;  %v685_v49 = vadd.f32 %v666_v45, %v665_v47 }
 0x1b1   :  { %v229_v54 = vpop.f32.mrf.mxu0  ;;  %326 = vadd.xlane.f32.xlu2 %v325_v53  ;;  %v270_v58 = vpop.f32.mrf.mxu1  ;;  %v1249_v35 = vadd.f32 %v627_v14, %v163_v7 }
 0x1b2   :  { %v1225_v10 = vadd.f32 %v229_v54, %v163_v7  ;;  %v1227_v11 = vadd.f32 %v270_v58, %v163_v7  ;;  %v682_v50 = vadd.f32 %v664_v46, %v663_v48  ;;  %v667_v58 = vmul.f32 %v1215_v61, %v1215_v61  ;;  %v589_v7 = vpop.f32.mrf.mxu2 }
 0x1b3   :  { %1440 = vst [vmem:[#allocation4_spill] sm:$0xff] %v1249_v35  ;;  %v651_v41 = vadd.f32 %v1249_v35, %v1255_v40 }
 0x1b4   :  { %v294_v18 = vadd.f32 %v1227_v11, %v1225_v10  ;;  %v312_v25 = vmul.f32 %v1225_v10, %v1225_v10  ;;  %v313_v19 = vmul.f32 %v1227_v11, %v1227_v11 }
 0x1b6   :  { %v334_v33 = vadd.f32 %v313_v19, %v312_v25 }
 0x1b8   :  { %649 = vadd.xlane.f32.xlu0 %v648_v63 }
 0x1b9   :  { %v232_v6 = vpop.f32.mrf.mxu0  ;;  %646 = vadd.xlane.f32.xlu2 %v645_v0  ;;  %v273_v9 = vpop.f32.mrf.mxu1  ;;  %v688_v0 = vadd.f32 %v668_v56, %v667_v58 }
 0x1ba   :  { %v1223_v8 = vadd.f32 %v232_v6, %v168_v2  ;;  %v1229_v12 = vadd.f32 %v273_v9, %v168_v2  ;;  %v630_v6 = vpop.f32.mrf.mxu3  ;;  %v670_v9 = vmul.f32 %v1249_v35, %v1249_v35 }
 0x1bc   :  { %v297_v17 = vadd.f32 %v1229_v12, %v1223_v8  ;;  %v314_v53 = vmul.f32 %v1223_v8, %v1223_v8  ;;  %v315_v54 = vmul.f32 %v1229_v12, %v1229_v12 }
 0x1be   :  { %298 = vadd.xlane.f32.xlu1 %v297_v17  ;;  %v337_v63 = vadd.f32 %v315_v54, %v314_v53  ;;  %v1277_v17 = vadd.f32 %v630_v6, %v168_v2 }
 0x1c0   :  { %295 = vadd.xlane.f32.xlu0 %v294_v18  ;;  %v669_v18 = vmul.f32 %v1255_v40, %v1255_v40  ;;  %v672_v23 = vmul.f32 %v1277_v17, %v1277_v17 }
 0x1c1   :  { %292 = vadd.xlane.f32.xlu2 %v291_v20  ;;  %v1281_v20 = vadd.f32 %v589_v7, %v168_v2 }
 0x1c2   :  { %v691_v21 = vadd.f32 %v670_v9, %v669_v18 }
 0x1c3   :  { %v654_v22 = vadd.f32 %v1277_v17, %v1281_v20  ;;  %v671_v24 = vmul.f32 %v1281_v20, %v1281_v20 }
 0x1c5   :  { %v694_v25 = vadd.f32 %v672_v23, %v671_v24 }
 0x1c6   :  { %674 = vadd.xlane.f32.xlu1 %v673_v32 }
 0x1c8   :  { %680 = vadd.xlane.f32.xlu0 %v679_v13 }
 0x1c9   :  { %335 = vadd.xlane.f32.xlu2 %v334_v33 }
 0x1d0   :  { %652 = vadd.xlane.f32.xlu0 %v651_v41 }
 0x1d1   :  { %677 = vadd.xlane.f32.xlu2 %v676_v43 }
 0x1d8   :  { %686 = vadd.xlane.f32.xlu0 %v685_v49 }
 0x1d9   :  { %683 = vadd.xlane.f32.xlu2 %v682_v50 }
 0x1e0   :  { %338 = vadd.xlane.f32.xlu0 %v337_v63 }
 0x1e1   :  { %689 = vadd.xlane.f32.xlu2 %v688_v0 }
 0x1e8   :  { %692 = vadd.xlane.f32.xlu0 %v691_v21 }
 0x1e9   :  { %655 = vadd.xlane.f32.xlu2 %v654_v22 }
 0x1f1   :  { %695 = vadd.xlane.f32.xlu2 %v694_v25 }
 0x1f9   :  { %v278_v36 = vpop.xlane.xlu1 %277 }
 0x1fb   :  { %v318_v19 = vpop.xlane.xlu2 %317 }
 0x203   :  { %v321_v32 = vpop.xlane.xlu0 %320  ;;  %v635_v13 = vpop.xlane.xlu2 %634 }
 0x20b   :  { %v1289_v14 = vpop.xlane.xlu0 %637  ;;  %v324_v43 = vpop.xlane.xlu1 %323 }
 0x20c   :  { %v281_v2 = vpop.xlane.xlu2 %280  ;;  %v346_v21 = vadd.f32 %v324_v43, %v318_v19 }
 0x213   :  { %v284_v33 = vpop.xlane.xlu0 %283 }
 0x214   :  { %v641_v34 = vpop.xlane.xlu2 %640  ;;  %v340_v53 = vadd.f32 %v284_v33, %v278_v36 }
 0x215   :  { %v697_v33 = vadd.f32 %v641_v34, %v635_v13 }
 0x219   :  { %v290_v47 = vpop.xlane.xlu1 %289 }
 0x21a   :  { %v342_v54 = vadd.f32 %v340_v53, %v290_v47 }
 0x21b   :  { %v644_v38 = vpop.xlane.xlu0 %643 }
 0x21c   :  { %v287_v41 = vpop.xlane.xlu2 %286 }
 0x21d   :  { %v341_v56 = vadd.f32 %v287_v41, %v281_v2 }
 0x223   :  { %v330_v45 = vpop.xlane.xlu0 %329  ;;  %v333_v50 = vpop.xlane.xlu1 %332 }
 0x224   :  { %v327_v46 = vpop.xlane.xlu2 %326  ;;  %v348_v23 = vadd.f32 %v346_v21, %v330_v45 }
 0x22b   :  { %v650_v48 = vpop.xlane.xlu0 %649 }
 0x22c   :  { %v647_v49 = vpop.xlane.xlu2 %646 }
 0x22d   :  { %v699_v2 = vadd.f32 %v697_v33, %v647_v49 }
 0x231   :  { %v299_v7 = vpop.xlane.xlu1 %298 }
 0x233   :  { %v296_v58 = vpop.xlane.xlu0 %295 }
 0x234   :  { %v344_v63 = vadd.f32 %v342_v54, %v296_v58  ;;  %v293_v0 = vpop.xlane.xlu2 %292 }
 0x235   :  { %v343_v6 = vadd.f32 %v341_v56, %v293_v0 }
 0x236   :  { %v352_v9 = vmul.f32 0.0009765625, %v344_v63  ;;  %v347_v63 = vadd.f32 %v327_v46, %v321_v32  ;;  %v698_v32 = vadd.f32 %v644_v38, %v1289_v14 }
 0x237   :  { %v345_v18 = vadd.f32 %v343_v6, %v299_v7 }
 0x238   :  { %384 = vperm.xlu1 %946, %v352_v9   ;;  %v356_v40 = vmul.f32 %v352_v9, %v352_v9  ;;  %v349_v7 = vadd.f32 %v347_v63, %v333_v50  ;;  %v700_v50 = vadd.f32 %v698_v32, %v650_v48 }
 0x239   :  { %v353_v22 = vmul.f32 0.0009765625, %v345_v18  ;;  %v675_v21 = vpop.xlane.xlu1 %674 }
 0x23b   :  { %389 = vperm.xlu0 %948, %v353_v22   ;;  %v681_v24 = vpop.xlane.xlu0 %680  ;;  %v357_v49 = vmul.f32 %v353_v22, %v353_v22 }
 0x23c   :  { %v336_v25 = vpop.xlane.xlu2 %335 }
 0x23d   :  { %v350_v35 = vadd.f32 %v348_v23, %v336_v25  ;;  %v703_v23 = vadd.f32 %v681_v24, %v675_v21 }
 0x23f   :  { %v354_v60 = vmul.f32 0.0009765625, %v350_v35 }
 0x241   :  { %v358_v36 = vsub.f32 %v354_v60, %v356_v40 }
 0x243   :  { %v360_v41 = vadd.f32 1e-05, %v358_v36  ;;  %v653_v47 = vpop.xlane.xlu0 %652 }
 0x244   :  { %v701_v53 = vadd.f32 %v699_v2, %v653_v47  ;;  %v678_v54 = vpop.xlane.xlu2 %677 }
 0x245   :  { %949 = vrsqrt.f32 %v360_v41  ;;  %vm368_vm7 = vweird.f32 %v360_v41 }
 0x246   :  { %v709_v56 = vmul.f32 0.0009765625, %v701_v53 }
 0x248   :  { %741 = vperm.xlu1 %946, %v709_v56  }
 0x24b   :  { %v950_v58 = vpop.eup %949  ;;  %v687_v19 = vpop.xlane.xlu0 %686 }
 0x24c   :  { %v363_v43 = vmul.f32 %v950_v58, %v360_v41  ;;  %v684_v45 = vpop.xlane.xlu2 %683  ;;  %vm369_vm6 = vweird.f32 %v950_v58  ;;  %v705_v46 = vadd.f32 %v703_v23, %v687_v19 }
 0x24d   :  { %vm370_vm8 = vmor %vm368_vm7, %vm369_vm6  ;;  %v704_v22 = vadd.f32 %v684_v45, %v678_v54 }
 0x24e   :  { %v364_v0 = vmul.f32 %v950_v58, %v363_v43  ;;  %v713_v43 = vmul.f32 %v709_v56, %v709_v56 }
 0x250   :  { %v365_v6 = vmul.f32 0.5, %v364_v0 }
 0x252   :  { %v366_v9 = vsub.f32 1.5, %v365_v6 }
 0x253   :  { %v339_v35 = vpop.xlane.xlu0 %338 }
 0x254   :  { %v351_v60 = vadd.f32 %v349_v7, %v339_v35  ;;  %v690_v40 = vpop.xlane.xlu2 %689  ;;  %v367_v13 = vmul.f32 %v950_v58, %v366_v9 }
 0x255   :  { %v706_v7 = vadd.f32 %v704_v22, %v690_v40 }
 0x256   :  { %v355_v34 = vmul.f32 0.0009765625, %v351_v60  ;;  %v371_v18 = vsel %vm370_vm8, %v950_v58, %v367_v13 }
 0x257   :  { %410 = vperm.xlu0 %948, %v371_v18  }
 0x258   :  { %v359_v25 = vsub.f32 %v355_v34, %v357_v49 }
 0x25a   :  { %v361_v33 = vadd.f32 1e-05, %v359_v25 }
 0x25b   :  { %v693_v36 = vpop.xlane.xlu0 %692 }
 0x25c   :  { %951 = vrsqrt.f32 %v361_v33  ;;  %v707_v2 = vadd.f32 %v705_v46, %v693_v36  ;;  %v656_v47 = vpop.xlane.xlu2 %655  ;;  %vm378_vm10 = vweird.f32 %v361_v33 }
 0x25d   :  { %v702_v53 = vadd.f32 %v700_v50, %v656_v47 }
 0x25e   :  { %v711_v41 = vmul.f32 0.0009765625, %v707_v2 }
 0x25f   :  { %v710_v63 = vmul.f32 0.0009765625, %v702_v53 }
 0x260   :  { %v715_v0 = vsub.f32 %v711_v41, %v713_v43 }
 0x261   :  { %746 = vperm.xlu2 %947, %v710_v63   ;;  %v714_v48 = vmul.f32 %v710_v63, %v710_v63 }
 0x262   :  { %v952_v58 = vpop.eup %951  ;;  %v717_v6 = vadd.f32 1e-05, %v715_v0 }
 0x263   :  { %v373_v24 = vmul.f32 %v952_v58, %v361_v33  ;;  %vm379_vm9 = vweird.f32 %v952_v58 }
 0x264   :  { %953 = vrsqrt.f32 %v717_v6  ;;  %v696_v14 = vpop.xlane.xlu2 %695  ;;  %vm380_vm11 = vmor %vm378_vm10, %vm379_vm9  ;;  %vm725_vm13 = vweird.f32 %v717_v6 }
 0x265   :  { %v708_v38 = vadd.f32 %v706_v7, %v696_v14  ;;  %v374_v19 = vmul.f32 %v952_v58, %v373_v24 }
 0x267   :  { %v712_v9 = vmul.f32 0.0009765625, %v708_v38  ;;  %v375_v35 = vmul.f32 0.5, %v374_v19 }
 0x269   :  { %v716_v60 = vsub.f32 %v712_v9, %v714_v48  ;;  %v376_v13 = vsub.f32 1.5, %v375_v35 }
 0x26a   :  { %v954_v56 = vpop.eup %953 }
 0x26b   :  { %v720_v34 = vmul.f32 %v954_v56, %v717_v6  ;;  %v718_v49 = vadd.f32 1e-05, %v716_v60  ;;  %v377_v18 = vmul.f32 %v952_v58, %v376_v13  ;;  %vm726_vm12 = vweird.f32 %v954_v56 }
 0x26c   :  { %vm727_vm14 = vmor %vm725_vm13, %vm726_vm12 }
 0x26d   :  { %955 = vrsqrt.f32 %v718_v49  ;;  %v381_v54 = vsel %vm380_vm11, %v952_v58, %v377_v18  ;;  %v721_v45 = vmul.f32 %v954_v56, %v720_v34  ;;  %vm735_vm0 = vweird.f32 %v718_v49 }
 0x26e   :  { %415 = vperm.xlu0 %948, %v381_v54  }
 0x26f   :  { %v722_v40 = vmul.f32 0.5, %v721_v45 }
 0x271   :  { %v723_v21 = vsub.f32 1.5, %v722_v40 }
 0x273   :  { %v956_v23 = vpop.eup %955  ;;  %v724_v25 = vmul.f32 %v954_v56, %v723_v21 }
 0x274   :  { %v730_v32 = vmul.f32 %v956_v23, %v718_v49  ;;  %vm736_vm15 = vweird.f32 %v956_v23 }
 0x275   :  { %v728_v46 = vsel %vm727_vm14, %v954_v56, %v724_v25  ;;  %vm737_vm1 = vmor %vm735_vm0, %vm736_vm15 }
 0x276   :  { %767 = vperm.xlu1 %946, %v728_v46   ;;  %v731_v50 = vmul.f32 %v956_v23, %v730_v32 }
 0x278   :  { %v732_v36 = vmul.f32 0.5, %v731_v50 }
 0x27a   :  { %v733_v2 = vsub.f32 1.5, %v732_v36 }
 0x27c   :  { %v734_v33 = vmul.f32 %v956_v23, %v733_v2 }
 0x27e   :  { %v738_v47 = vsel %vm737_vm1, %v956_v23, %v734_v33 }
 0x27f   :  { %772 = vperm.xlu2 %947, %v738_v47  }
 0x2aa   :  { %v385_v43 = vpop.permute.xlu1 %384 }
 0x2ab   :  { %v392_v41 = vsub.f32 %v1129_v42, %v385_v43  ;;  %v393_v63 = vsub.f32 %v1131_v44, %v385_v43  ;;  %v396_v0 = vsub.f32 %v1153_v1, %v385_v43  ;;  %v397_v22 = vsub.f32 %v1159_v5, %v385_v43 }
 0x2ac   :  { %v400_v58 = vsub.f32 %v1177_v26, %v385_v43  ;;  %v401_v6 = vsub.f32 %v1181_v28, %v385_v43  ;;  %v404_v24 = vsub.f32 %v1225_v10, %v385_v43  ;;  %v405_v7 = vsub.f32 %v1227_v11, %v385_v43 }
 0x2ad   :  { %v1292_v53 = vpop.permute.xlu0 %389 }
 0x2ae   :  { %v394_v32 = vsub.f32 %v1143_v55, %v1292_v53  ;;  %v395_v46 = vsub.f32 %v1145_v57, %v1292_v53 }
 0x2bb   :  { %v747_v40 = vpop.permute.xlu2 %746 }
 0x2bc   :  { %v751_v50 = vsub.f32 %v1155_v3, %v747_v40  ;;  %v752_v36 = vsub.f32 %v1157_v4, %v747_v40  ;;  %v755_v2 = vsub.f32 %v1187_v31, %v747_v40  ;;  %v756_v33 = vsub.f32 %v1179_v27, %v747_v40 }
 0x2bd   :  { %v759_v47 = vsub.f32 %v1215_v61, %v747_v40  ;;  %v760_v43 = vsub.f32 %v1211_v59, %v747_v40  ;;  %v398_v61 = vsub.f32 %v1183_v29, %v1292_v53 }
 0x2c9   :  { %v411_v14 = vpop.permute.xlu0 %410 }
 0x2ca   :  { %v418_v38 = vmul.f32 %v411_v14, %v392_v41  ;;  %v419_v19 = vmul.f32 %v411_v14, %v393_v63  ;;  %v422_v48 = vmul.f32 %v411_v14, %v396_v0  ;;  %v423_v9 = vmul.f32 %v411_v14, %v397_v22 }
 0x2cb   :  { %v426_v42 = vmul.f32 %v411_v14, %v400_v58  ;;  %v427_v35 = vmul.f32 %v411_v14, %v401_v6  ;;  %v430_v44 = vmul.f32 %v411_v14, %v404_v24  ;;  %v431_v60 = vmul.f32 %v411_v14, %v405_v7 }
 0x2cc   :  { %v434_v1 = vmul.f32 0.01, %v418_v38  ;;  %v435_v13 = vmul.f32 0.01, %v419_v19  ;;  %v438_v5 = vmul.f32 0.01, %v422_v48  ;;  %v763_v41 = vsub.f32 %v1281_v20, %v747_v40 }
 0x2cd   :  { %v439_v56 = vmul.f32 0.01, %v423_v9  ;;  %v442_v26 = vmul.f32 0.01, %v426_v42  ;;  %v443_v34 = vmul.f32 0.01, %v427_v35  ;;  %v764_v63 = vsub.f32 %v1277_v17, %v747_v40 }
 0x2ce   :  { %v446_v28 = vmul.f32 0.01, %v430_v44  ;;  %v450_v49 = vmax.f32 %v418_v38, %v434_v1  ;;  %v451_v10 = vmax.f32 %v419_v19, %v435_v13  ;;  %v447_v18 = vmul.f32 0.01, %v431_v60  ;;  %v742_v1 = vpop.permute.xlu1 %741 }
 0x2cf   :  { %v454_v11 = vmax.f32 %v422_v48, %v438_v5  ;;  %v455_v54 = vmax.f32 %v423_v9, %v439_v56  ;;  %v458_v45 = vmax.f32 %v426_v42, %v442_v26  ;;  %v459_v21 = vmax.f32 %v427_v35, %v443_v34 }
 0x2d0   :  { %466 = vst [vmem:[%s1435_s5] sm:$0xff] %v450_v49  ;;  %v462_v23 = vmax.f32 %v430_v44, %v446_v28  ;;  %v463_v25 = vmax.f32 %v431_v60, %v447_v18  ;;  %v399_v17 = vsub.f32 %v1185_v30, %v1292_v53  ;;  %v402_v9 = vsub.f32 %v1195_v37, %v1292_v53 }
 0x2d1   :  { %467 = vst [vmem:[%s1435_s5 + $0x8] sm:$0xff] %v451_v10  ;;  %v403_v60 = vsub.f32 %v1197_v39, %v1292_v53  ;;  %v406_v30 = vsub.f32 %v1223_v8, %v1292_v53  ;;  %v407_v5 = vsub.f32 %v1229_v12, %v1292_v53  ;;  %v749_v40 = vsub.f32 %v1139_v51, %v742_v1 }
 0x2d2   :  { %470 = vst [vmem:[%s1435_s5 + $0x20] sm:$0xff] %v454_v11  ;;  %v754_v51 = vsub.f32 %v1171_v16, %v742_v1 }
 0x2d3   :  { %471 = vst [vmem:[%s1435_s5 + $0x28] sm:$0xff] %v455_v54 }
 0x2d4   :  { %474 = vst [vmem:[%s1435_s5 + $0x40] sm:$0xff] %v458_v45 }
 0x2d5   :  { %475 = vst [vmem:[%s1435_s5 + $0x48] sm:$0xff] %v459_v21  ;;  %v750_v21 = vsub.f32 %v1141_v52, %v742_v1 }
 0x2d6   :  { %478 = vst [vmem:[%s1435_s5 + $0x60] sm:$0xff] %v462_v23 }
 0x2d7   :  { %479 = vst [vmem:[%s1435_s5 + $0x68] sm:$0xff] %v463_v25 }
 0x2d9   :  { %v773_v55 = vpop.permute.xlu2 %772 }
 0x2da   :  { %v777_v0 = vmul.f32 %v773_v55, %v751_v50  ;;  %v778_v22 = vmul.f32 %v773_v55, %v752_v36  ;;  %v781_v57 = vmul.f32 %v773_v55, %v755_v2  ;;  %v782_v58 = vmul.f32 %v773_v55, %v756_v33 }
 0x2db   :  { %v785_v3 = vmul.f32 %v773_v55, %v759_v47  ;;  %v786_v6 = vmul.f32 %v773_v55, %v760_v43  ;;  %v789_v4 = vmul.f32 %v773_v55, %v763_v41  ;;  %v790_v24 = vmul.f32 %v773_v55, %v764_v63  ;;  %v1442_v43 = vld [vmem:[#allocation3_spill] sm:$0xff] }
 0x2dc   :  { %v793_v31 = vmul.f32 0.01, %v777_v0  ;;  %v794_v7 = vmul.f32 0.01, %v778_v22  ;;  %v797_v27 = vmul.f32 0.01, %v781_v57  ;;  %v753_v2 = vsub.f32 %v1169_v15, %v742_v1 }
 0x2dd   :  { %v798_v59 = vmul.f32 0.01, %v782_v58  ;;  %v801_v14 = vmul.f32 0.01, %v785_v3  ;;  %v802_v20 = vmul.f32 0.01, %v786_v6  ;;  %v757_v47 = vsub.f32 %v1217_v62, %v742_v1 }
 0x2de   :  { %v805_v38 = vmul.f32 0.01, %v789_v4  ;;  %v809_v19 = vmax.f32 %v777_v0, %v793_v31  ;;  %v810_v48 = vmax.f32 %v778_v22, %v794_v7  ;;  %v806_v42 = vmul.f32 0.01, %v790_v24  ;;  %v1443_v0 = vld [vmem:[#allocation5_spill] sm:$0xff]  ;;  %v1444_v22 = vld [vmem:[#allocation4_spill] sm:$0xff] }
 0x2df   :  { %v813_v35 = vmax.f32 %v781_v57, %v797_v27  ;;  %v814_v44 = vmax.f32 %v782_v58, %v798_v59  ;;  %v817_v29 = vmax.f32 %v785_v3, %v801_v14  ;;  %v818_v13 = vmax.f32 %v786_v6, %v802_v20 }
 0x2e0   :  { %880 = vst [vmem:[%s1435_s5 + $0x90] sm:$0xff] %v809_v19  ;;  %v416_v37 = vpop.permute.xlu0 %415  ;;  %v821_v28 = vmax.f32 %v789_v4, %v805_v38  ;;  %v822_v18 = vmax.f32 %v790_v24, %v806_v42  ;;  %v758_v41 = vsub.f32 %v1442_v43, %v742_v1  ;;  %v761_v15 = vsub.f32 %v1443_v0, %v742_v1 }
 0x2e1   :  { %881 = vst [vmem:[%s1435_s5 + $0x98] sm:$0xff] %v810_v48  ;;  %v420_v56 = vmul.f32 %v416_v37, %v394_v32  ;;  %v421_v39 = vmul.f32 %v416_v37, %v395_v46  ;;  %v424_v26 = vmul.f32 %v416_v37, %v398_v61  ;;  %v425_v34 = vmul.f32 %v416_v37, %v399_v17 }
 0x2e2   :  { %884 = vst [vmem:[%s1435_s5 + $0xb0] sm:$0xff] %v813_v35  ;;  %v428_v49 = vmul.f32 %v416_v37, %v402_v9  ;;  %v429_v10 = vmul.f32 %v416_v37, %v403_v60  ;;  %v432_v8 = vmul.f32 %v416_v37, %v406_v30  ;;  %v433_v12 = vmul.f32 %v416_v37, %v407_v5 }
 0x2e3   :  { %885 = vst [vmem:[%s1435_s5 + $0xb8] sm:$0xff] %v814_v44  ;;  %v436_v53 = vmul.f32 0.01, %v420_v56  ;;  %v437_v11 = vmul.f32 0.01, %v421_v39  ;;  %v762_v16 = vsub.f32 %v1444_v22, %v742_v1 }
 0x2e4   :  { %888 = vst [vmem:[%s1435_s5 + $0xd0] sm:$0xff] %v817_v29  ;;  %v440_v54 = vmul.f32 0.01, %v424_v26  ;;  %v441_v45 = vmul.f32 0.01, %v425_v34 }
 0x2e5   :  { %889 = vst [vmem:[%s1435_s5 + $0xd8] sm:$0xff] %v818_v13  ;;  %v444_v23 = vmul.f32 0.01, %v428_v49  ;;  %v445_v25 = vmul.f32 0.01, %v429_v10  ;;  %v452_v32 = vmax.f32 %v420_v56, %v436_v53  ;;  %v453_v46 = vmax.f32 %v421_v39, %v437_v11 }
 0x2e6   :  { %892 = vst [vmem:[%s1435_s5 + $0xf0] sm:$0xff] %v821_v28  ;;  %v448_v50 = vmul.f32 0.01, %v432_v8  ;;  %v456_v36 = vmax.f32 %v424_v26, %v440_v54  ;;  %v449_v52 = vmul.f32 0.01, %v433_v12  ;;  %v457_v33 = vmax.f32 %v425_v34, %v441_v45 }
 0x2e7   :  { %893 = vst [vmem:[%s1435_s5 + $0xf8] sm:$0xff] %v822_v18  ;;  %v460_v63 = vmax.f32 %v428_v49, %v444_v23  ;;  %v461_v55 = vmax.f32 %v429_v10, %v445_v25 }
 0x2e8   :  { %468 = vst [vmem:[%s1435_s5 + $0x10] sm:$0xff] %v452_v32  ;;  %v768_v57 = vpop.permute.xlu1 %767  ;;  %v464_v4 = vmax.f32 %v432_v8, %v448_v50  ;;  %v465_v27 = vmax.f32 %v433_v12, %v449_v52 }
 0x2e9   :  { %469 = vst [vmem:[%s1435_s5 + $0x18] sm:$0xff] %v453_v46  ;;  %v775_v58 = vmul.f32 %v768_v57, %v749_v40  ;;  %v776_v3 = vmul.f32 %v768_v57, %v750_v21  ;;  %v779_v62 = vmul.f32 %v768_v57, %v753_v2  ;;  %v780_v6 = vmul.f32 %v768_v57, %v754_v51 }
 0x2ea   :  { %472 = vst [vmem:[%s1435_s5 + $0x30] sm:$0xff] %v456_v36  ;;  %v783_v24 = vmul.f32 %v768_v57, %v757_v47  ;;  %v784_v31 = vmul.f32 %v768_v57, %v758_v41  ;;  %v787_v7 = vmul.f32 %v768_v57, %v761_v15  ;;  %v788_v61 = vmul.f32 %v768_v57, %v762_v16 }
 0x2eb   :  { %473 = vst [vmem:[%s1435_s5 + $0x38] sm:$0xff] %v457_v33  ;;  %v791_v59 = vmul.f32 0.01, %v775_v58  ;;  %v792_v14 = vmul.f32 0.01, %v776_v3 }
 0x2ec   :  { %476 = vst [vmem:[%s1435_s5 + $0x50] sm:$0xff] %v460_v63  ;;  %v795_v20 = vmul.f32 0.01, %v779_v62  ;;  %v796_v17 = vmul.f32 0.01, %v780_v6 }
 0x2ed   :  { %477 = vst [vmem:[%s1435_s5 + $0x58] sm:$0xff] %v461_v55  ;;  %v799_v38 = vmul.f32 0.01, %v783_v24  ;;  %v800_v19 = vmul.f32 0.01, %v784_v31  ;;  %v807_v48 = vmax.f32 %v775_v58, %v791_v59  ;;  %v808_v9 = vmax.f32 %v776_v3, %v792_v14 }
 0x2ee   :  { %480 = vst [vmem:[%s1435_s5 + $0x70] sm:$0xff] %v464_v4  ;;  %v803_v42 = vmul.f32 0.01, %v787_v7  ;;  %v811_v35 = vmax.f32 %v779_v62, %v795_v20  ;;  %v804_v44 = vmul.f32 0.01, %v788_v61  ;;  %v812_v60 = vmax.f32 %v780_v6, %v796_v17 }
 0x2ef   :  { %481 = vst [vmem:[%s1435_s5 + $0x78] sm:$0xff] %v465_v27  ;;  %v815_v1 = vmax.f32 %v783_v24, %v799_v38  ;;  %v816_v29 = vmax.f32 %v784_v31, %v800_v19 }
 0x2f0   :  { %878 = vst [vmem:[%s1435_s5 + $0x80] sm:$0xff] %v807_v48  ;;  %v819_v13 = vmax.f32 %v787_v7, %v803_v42  ;;  %v820_v30 = vmax.f32 %v788_v61, %v804_v44 }
 0x2f1   :  { %879 = vst [vmem:[%s1435_s5 + $0x88] sm:$0xff] %v808_v9 }
 0x2f2   :  { %882 = vst [vmem:[%s1435_s5 + $0xa0] sm:$0xff] %v811_v35 }
 0x2f3   :  { %883 = vst [vmem:[%s1435_s5 + $0xa8] sm:$0xff] %v812_v60 }
 0x2f4   :  { %886 = vst [vmem:[%s1435_s5 + $0xc0] sm:$0xff] %v815_v1 }
 0x2f5   :  { %887 = vst [vmem:[%s1435_s5 + $0xc8] sm:$0xff] %v816_v29 }
 0x2f6   :  { %890 = vst [vmem:[%s1435_s5 + $0xe0] sm:$0xff] %v819_v13 }
 0x2f7   :  { %891 = vst [vmem:[%s1435_s5 + $0xe8] sm:$0xff] %v820_v30 }

</bundles_post_ra>
